<compile_context>
chip_gen: v5e
topology: v5e:2x2
jax: 0.10.0
libtpu: 0.0.40
codegen_flags: <defaults>
</compile_context>

<pallas_src>
import functools
import math

import jax
import jax.numpy as jnp
from jax.experimental import pallas as pl
from jax.experimental.pallas import tpu as pltpu


def _round_up(a, m):
    return ((a + m - 1) // m) * m


CONV_VMEM = 32 * 1024 * 1024
FC_VMEM = 40 * 1024 * 1024


# ----------------------- Pallas matmul (+bias, +ReLU) -----------------------
# x tile bf16, w tile bf16 (pre-packed (K, N)), f32 accumulation, f32 bias.

def _mm_1k_kernel(x_ref, w_ref, b_ref, o_ref, *, relu):
    # Single k-step: no VMEM accumulator needed.
    y = jnp.dot(x_ref[...], w_ref[...],
                preferred_element_type=jnp.float32) + b_ref[...]
    if relu:
        y = jnp.maximum(y, 0.0)
    o_ref[...] = y.astype(o_ref.dtype)


def _mm_acc_kernel(x_ref, w_ref, b_ref, o_ref, acc_ref, *, relu):
    @pl.when(pl.program_id(2) == 0)
    def _():
        acc_ref[...] = jnp.zeros_like(acc_ref)

    acc_ref[...] += jnp.dot(x_ref[...], w_ref[...],
                            preferred_element_type=jnp.float32)

    @pl.when(pl.program_id(2) == pl.num_programs(2) - 1)
    def _():
        y = acc_ref[...] + b_ref[...]
        if relu:
            y = jnp.maximum(y, 0.0)
        o_ref[...] = y.astype(o_ref.dtype)


def matmul_bias_act(x, w, b2d, *, relu, tm, tn, tk, out_dtype,
                    vmem_bytes=CONV_VMEM):
    """y = (x @ w + b) [+ReLU].  x:(M,K) bf16, w:(K,N) bf16, b2d:(1,N) f32.
    tk must divide K and tn must divide N; M may be ragged (masked last block)."""
    M, K = x.shape
    K2, N = w.shape
    assert K == K2 and K % tk == 0 and N % tn == 0
    gm, gn, gk = pl.cdiv(M, tm), N // tn, K // tk

    if gk == 1:
        kernel = functools.partial(_mm_1k_kernel, relu=relu)
        grid = (gm, gn)
        in_specs = [pl.BlockSpec((tm, tk), lambda i, j: (i, 0)),
                    pl.BlockSpec((tk, tn), lambda i, j: (0, j)),
                    pl.BlockSpec((1, tn), lambda i, j: (0, j))]
        out_specs = pl.BlockSpec((tm, tn), lambda i, j: (i, j))
        scratch = []
        dims = ("parallel", "parallel")
    else:
        kernel = functools.partial(_mm_acc_kernel, relu=relu)
        grid = (gm, gn, gk)
        in_specs = [pl.BlockSpec((tm, tk), lambda i, j, k: (i, k)),
                    pl.BlockSpec((tk, tn), lambda i, j, k: (k, j)),
                    pl.BlockSpec((1, tn), lambda i, j, k: (0, j))]
        out_specs = pl.BlockSpec((tm, tn), lambda i, j, k: (i, j))
        scratch = [pltpu.VMEM((tm, tn), jnp.float32)]
        dims = ("parallel", "parallel", "arbitrary")

    return pl.pallas_call(
        kernel,
        out_shape=jax.ShapeDtypeStruct((M, N), out_dtype),
        grid_spec=pltpu.PrefetchScalarGridSpec(
            num_scalar_prefetch=0, grid=grid, in_specs=in_specs,
            out_specs=out_specs, scratch_shapes=scratch),
        compiler_params=pltpu.CompilerParams(
            dimension_semantics=dims, vmem_limit_bytes=vmem_bytes),
    )(x, w, b2d)


# --------------------- conv1: bf16 im2col + matmul ---------------------------

def _im2col_nhwc(x, kh, kw, stride, pad):
    """x: (N, H, W, C) -> (N*OH*OW, kh*kw*C), same dtype as x (bf16)."""
    if pad:
        x = jnp.pad(x, ((0, 0), (pad, pad), (pad, pad), (0, 0)))
    N, H, W, C = x.shape
    oh = (H - kh) // stride + 1
    ow = (W - kw) // stride + 1
    cols = []
    for i in range(kh):
        for j in range(kw):
            cols.append(x[:, i:i + stride * (oh - 1) + 1:stride,
                             j:j + stride * (ow - 1) + 1:stride, :])
    p = jnp.stack(cols, axis=3)                 # (N, oh, ow, kh*kw, C)
    return p.reshape(N * oh * ow, kh * kw * C), oh, ow


# ------------- conv2..conv5: implicit-GEMM "slab" convolution ----------------
# The padded NHWC input is flattened row-major to (N*Hp*Wp, Cin_g); for a
# stride-1 conv each (i, j) kernel tap is the contiguous row slab shifted by
# i*Wp + j, so the conv is  sum_t  slab_t @ W_t  with K = Cin_g per tap.
# Rows whose flat position has w >= OW (or h >= OH) are over-computed garbage
# and discarded by a cheap XLA slice afterwards.  Groups are a 'parallel' grid
# axis of the same pallas_call.

SLAB_CFG = {
    'conv2': dict(k=5, pad=2, groups=2, tn=128),
    'conv3': dict(k=3, pad=1, groups=1, tn=128),
    'conv4': dict(k=3, pad=1, groups=2, tn=192),
    'conv5': dict(k=3, pad=1, groups=2, tn=128),
}


def _conv_slab_kernel(x_ref, w_ref, b_ref, o_ref, *, k, wp, cin):
    # x_ref: (1, m_in, cin) bf16 ; w_ref: (1, k*k*cin, tn) bf16
    # b_ref: (1, 1, tn) f32     ; o_ref: (1, m_dot, tn) bf16
    m = o_ref.shape[1]
    tn = o_ref.shape[2]
    acc = jnp.zeros((m, tn), jnp.float32)
    t = 0
    for i in range(k):
        for j in range(k):
            off = i * wp + j
            xs = x_ref[0, off:off + m, :]
            ws = w_ref[0, t * cin:(t + 1) * cin, :]
            acc = acc + jnp.dot(xs, ws, preferred_element_type=jnp.float32)
            t += 1
    y = jnp.maximum(acc + b_ref[0], 0.0)
    o_ref[0] = y.astype(o_ref.dtype)


def conv_slab(pp, name, x):
    """Grouped/plain stride-1 'same' conv + ReLU, NHWC bf16 in/out."""
    cfg = SLAB_CFG[name]
    k, pad, g, tn = cfg['k'], cfg['pad'], cfg['groups'], cfg['tn']
    w, b = pp[name]                       # (g, k*k*Cg, Cout_g) bf16, (g,1,Cout_g) f32
    N, H, W, Cin = x.shape
    cg = Cin // g
    cout_g = w.shape[2]
    Hp, Wp = H + 2 * pad, W + 2 * pad
    oh, ow = Hp - k + 1, Wp - k + 1       # == H, W for these layers

    m_out = N * Hp * Wp
    m_dot = _round_up(m_out, 8)
    max_off = (k - 1) * Wp + (k - 1)
    m_in = m_dot + max_off

    xp = jnp.pad(x, ((0, 0), (pad, pad), (pad, pad), (0, 0)))
    xg = xp.reshape(N, Hp, Wp, g, cg).transpose(3, 0, 1, 2, 4)
    xg = xg.reshape(g, m_out, cg)
    xg = jnp.pad(xg, ((0, 0), (0, m_in - m_out), (0, 0)))

    npg = cout_g // tn
    out = pl.pallas_call(
        functools.partial(_conv_slab_kernel, k=k, wp=Wp, cin=cg),
        out_shape=jax.ShapeDtypeStruct((g, m_dot, cout_g), jnp.bfloat16),
        grid=(g, npg),
        in_specs=[
            pl.BlockSpec((1, m_in, cg), lambda gi, ni: (gi, 0, 0)),
            pl.BlockSpec((1, k * k * cg, tn), lambda gi, ni: (gi, 0, ni)),
            pl.BlockSpec((1, 1, tn), lambda gi, ni: (gi, 0, ni)),
        ],
        out_specs=pl.BlockSpec((1, m_dot, tn), lambda gi, ni: (gi, 0, ni)),
        compiler_params=pltpu.CompilerParams(
            dimension_semantics=("parallel", "parallel"),
            vmem_limit_bytes=CONV_VMEM),
    )(xg, w, b)

    y = out[:, :m_out, :].reshape(g, N, Hp, Wp, cout_g)[:, :, :oh, :ow, :]
    y = jnp.transpose(y, (1, 2, 3, 0, 4)).reshape(N, oh, ow, g * cout_g)
    return y


# -------------------------------- MaxPool -----------------------------------
# Flat slab kernel: unstrided 3x3 max over the flattened (N*H*W, C) rows via
# shifted-row maxima; the stride-2 subsample (and garbage-row discard) is a
# cheap XLA strided slice on the (small) result.

def _maxpool_slab_kernel(x_ref, o_ref, *, w_len, m_out):
    r = x_ref[0:m_out, :]
    for i in range(3):
        for j in range(3):
            if i == 0 and j == 0:
                continue
            off = i * w_len + j
            r = jnp.maximum(r, x_ref[off:off + m_out, :])
    o_ref[...] = r


def maxpool_3x3_s2_nhwc(x):
    """MaxPool2d(kernel_size=3, stride=2, ceil_mode=True) on NHWC input.  For
    every spatial size in this network (55/27/13, odd) ceil and floor output
    sizes coincide (no partial windows), so valid pooling is exact."""
    N, H, W, C = x.shape
    assert H % 2 == 1 and W % 2 == 1
    m_out = N * H * W
    tail = 2 * W + 2
    xf = jnp.pad(x.reshape(m_out, C), ((0, tail), (0, 0)))

    out = pl.pallas_call(
        functools.partial(_maxpool_slab_kernel, w_len=W, m_out=m_out),
        out_shape=jax.ShapeDtypeStruct((m_out, C), x.dtype),
        grid=(1,),
        in_specs=[pl.BlockSpec((m_out + tail, C), lambda i: (0, 0))],
        out_specs=pl.BlockSpec((m_out, C), lambda i: (0, 0)),
    )(xf)
    # valid 3x3-window top-lefts are h,w <= H-3 / W-3; subsample with stride 2.
    return out.reshape(N, H, W, C)[:, 0:H - 2:2, 0:W - 2:2, :]


# --------------------------- LocalResponseNorm ------------------------------
# Lane-dense (N*H*W rows, C lanes).  The channel-window sum of squares is a
# banded bf16 matmul on the MXU; base**-0.75 uses rsqrt+sqrt (EUP) in f32.

def _lrn_kernel(x_ref, band_ref, o_ref, *, size, alpha, beta, k):
    x = x_ref[...]
    ss = jnp.dot(x * x, band_ref[...], preferred_element_type=jnp.float32)
    base = k + (alpha / size) * ss          # avg_pool with count_include_pad=True
    if beta == 0.75:
        r = jax.lax.rsqrt(base)             # base >= k = 1 > 0
        inv = r * jnp.sqrt(r)               # base**(-0.75)
    else:
        inv = jnp.exp(-beta * jnp.log(base))
    o_ref[...] = (x.astype(jnp.float32) * inv).astype(o_ref.dtype)


def _lrn_band(C, size=5):
    """band[i, c] == 1 iff input channel i lies in the LRN window of output c."""
    d = jnp.arange(C)[:, None] - jnp.arange(C)[None, :]
    band = (d >= -(size // 2)) & (d <= (size - 1) - size // 2)
    return band.astype(jnp.bfloat16)        # exact 0/1 in bf16


def lrn_nhwc(x, band, size=5, alpha=1e-4, beta=0.75, k=1.0):
    """PyTorch nn.LocalResponseNorm semantics, NHWC bf16 input."""
    N, H, W, C = x.shape
    M = N * H * W
    xr = x.reshape(M, C)
    bm = max(8, _round_up(-(-M // 2), 8))   # >=2 row blocks for megacore

    out = pl.pallas_call(
        functools.partial(_lrn_kernel, size=size, alpha=alpha, beta=beta, k=k),
        out_shape=jax.ShapeDtypeStruct((M, C), x.dtype),
        grid=(pl.cdiv(M, bm),),
        in_specs=[pl.BlockSpec((bm, C), lambda i: (i, 0)),
                  pl.BlockSpec((C, C), lambda i: (0, 0))],
        out_specs=pl.BlockSpec((bm, C), lambda i: (i, 0)),
        compiler_params=pltpu.CompilerParams(
            dimension_semantics=("parallel",)),
    )(xr, band)
    return out.reshape(N, H, W, C)


def _lrn_ref(x, size=5, alpha=1e-4, beta=0.75, k=1.0):
    """Pure-jnp f32 reference (PyTorch semantics) for self-checking, NHWC."""
    C = x.shape[-1]
    sq = jnp.pad(x * x, ((0, 0), (0, 0), (0, 0), (size // 2, (size - 1) // 2)))
    ss = sum(sq[..., s:s + C] for s in range(size))
    return x / (k + (alpha / size) * ss) ** beta


def _conv_ref_nhwc(x_bf16, w_oihw, b, stride, pad, groups):
    """f32 lax.conv reference using bf16-rounded operands (matches kernel)."""
    xr = x_bf16.astype(jnp.float32)
    wr = w_oihw.astype(jnp.bfloat16).astype(jnp.float32)
    y = jax.lax.conv_general_dilated(
        xr, jnp.transpose(wr, (2, 3, 1, 0)),
        window_strides=(stride, stride), padding=[(pad, pad), (pad, pad)],
        dimension_numbers=('NHWC', 'HWIO', 'NHWC'),
        feature_group_count=groups, precision=jax.lax.Precision.HIGHEST)
    return jnp.maximum(y + b, 0.0)


# ------------------------------ Parameters ----------------------------------

def init_params(key, num_classes=100):
    """Random params in PyTorch layout (conv: (Cout, Cin/g, KH, KW), fc: (out, in))."""
    def conv_init(kk, cout, cin, kh, kw):
        kw_, kb_ = jax.random.split(kk)
        fan_in = cin * kh * kw
        w = jax.random.normal(kw_, (cout, cin, kh, kw), jnp.float32) / math.sqrt(fan_in)
        b = jax.random.normal(kb_, (cout,), jnp.float32) * 0.01
        return w, b

    def fc_init(kk, cout, cin):
        kw_, kb_ = jax.random.split(kk)
        w = jax.random.normal(kw_, (cout, cin), jnp.float32) / math.sqrt(cin)
        b = jax.random.normal(kb_, (cout,), jnp.float32) * 0.01
        return w, b

    keys = jax.random.split(key, 8)
    return {
        'conv1': conv_init(keys[0], 96, 3, 11, 11),
        'conv2': conv_init(keys[1], 256, 48, 5, 5),    # groups=2
        'conv3': conv_init(keys[2], 384, 256, 3, 3),
        'conv4': conv_init(keys[3], 384, 192, 3, 3),   # groups=2
        'conv5': conv_init(keys[4], 256, 192, 3, 3),   # groups=2
        'fc6': fc_init(keys[5], 4096, 256 * 6 * 6),
        'fc7': fc_init(keys[6], 4096, 4096),
        'fc8': fc_init(keys[7], num_classes, 4096),
    }


def prepare_params(params):
    """One-time repack OUTSIDE jit:
      conv1            -> (KH*KW*Cin, Cout) bf16, bias (1, Cout) f32
      conv2..conv5     -> stacked (g, KH*KW*Cin_g, Cout_g) bf16, bias (g,1,Cout_g) f32
      fc6/fc7/fc8      -> (K, N) bf16 (fc6 rows permuted CHW->HWC for NHWC flatten)
      LRN band matrices (exact 0/1) in bf16."""
    pp = {}

    w1, b1 = params['conv1']
    cout, cin, kh, kw = w1.shape
    pp['conv1'] = (jnp.transpose(w1, (2, 3, 1, 0)).reshape(kh * kw * cin, cout)
                   .astype(jnp.bfloat16),
                   b1.reshape(1, cout).astype(jnp.float32))

    for name, cfg in SLAB_CFG.items():
        w, b = params[name]
        g = cfg['groups']
        cout, cin_g, kh, kw = w.shape
        cg_out = cout // g
        ws, bs = [], []
        for gi in range(g):
            wg = w[gi * cg_out:(gi + 1) * cg_out]                  # (cg, cin_g, kh, kw)
            wg = jnp.transpose(wg, (2, 3, 1, 0)).reshape(kh * kw * cin_g, cg_out)
            ws.append(wg)
            bs.append(b[gi * cg_out:(gi + 1) * cg_out].reshape(1, cg_out))
        pp[name] = (jnp.stack(ws).astype(jnp.bfloat16),
                    jnp.stack(bs).astype(jnp.float32))

    w6, b6 = params['fc6']
    o6 = w6.shape[0]
    w6 = w6.reshape(o6, 256, 6, 6).transpose(0, 2, 3, 1).reshape(o6, 256 * 6 * 6)
    pp['fc6'] = (w6.T.astype(jnp.bfloat16), b6.reshape(1, -1).astype(jnp.float32))
    w7, b7 = params['fc7']
    pp['fc7'] = (w7.T.astype(jnp.bfloat16), b7.reshape(1, -1).astype(jnp.float32))
    w8, b8 = params['fc8']
    pp['fc8'] = (w8.T.astype(jnp.bfloat16), b8.reshape(1, -1).astype(jnp.float32))

    pp['lrn96'] = _lrn_band(96)
    pp['lrn256'] = _lrn_band(256)
    return pp


# -------------------------------- Forward -----------------------------------

@jax.jit
def alexnet_caffe_forward(pp, x):
    # x: (N, 3, 227, 227) NCHW f32 (PyTorch layout).  One NHWC transpose up
    # front, then everything stays channels-last bf16 (lane-dense).
    n = x.shape[0]
    x = (jnp.transpose(x, (0, 2, 3, 1)) * 57.6).astype(jnp.bfloat16)

    # conv1 (11x11 / stride 4): bf16 im2col + single-k MXU matmul.
    patches, oh, ow = _im2col_nhwc(x, 11, 11, 4, 0)
    w1, b1 = pp['conv1']
    x = matmul_bias_act(patches, w1, b1, relu=True, tm=1024, tn=96, tk=363,
                        out_dtype=jnp.bfloat16).reshape(n, oh, ow, 96)

    x = maxpool_3x3_s2_nhwc(x)
    x = lrn_nhwc(x, pp['lrn96'])
    x = conv_slab(pp, 'conv2', x)
    x = maxpool_3x3_s2_nhwc(x)
    x = lrn_nhwc(x, pp['lrn256'])
    x = conv_slab(pp, 'conv3', x)
    x = conv_slab(pp, 'conv4', x)
    x = conv_slab(pp, 'conv5', x)
    x = maxpool_3x3_s2_nhwc(x)

    # NHWC flatten (fc6 rows pre-permuted to match PyTorch's NCHW .view());
    # pad the batch to one sublane tile once and keep it padded through the FCs.
    xf = x.reshape(n, -1)
    npad = _round_up(n, 8)
    if npad != n:
        xf = jnp.pad(xf, ((0, npad - n), (0, 0)))

    w6, b6 = pp['fc6']
    h = matmul_bias_act(xf, w6, b6, relu=True, tm=8, tn=2048, tk=3072,
                        out_dtype=jnp.bfloat16, vmem_bytes=FC_VMEM)
    # TODO(synk): drop6/drop7 are nn.Dropout -> identity here (eval-mode semantics).
    w7, b7 = pp['fc7']
    h = matmul_bias_act(h, w7, b7, relu=True, tm=8, tn=2048, tk=2048,
                        out_dtype=jnp.bfloat16, vmem_bytes=FC_VMEM)
    w8, b8 = pp['fc8']
    out = matmul_bias_act(h, w8, b8, relu=False, tm=8, tn=w8.shape[1], tk=4096,
                          out_dtype=jnp.float32, vmem_bytes=FC_VMEM)
    return out[:n]


if __name__ == "__main__":
    key = jax.random.PRNGKey(0)
    kp, kx, k1, k2, k3, k4, k5, k6 = jax.random.split(key, 8)

    params = init_params(kp, num_classes=100)
    pp = prepare_params(params)

    # --- small self-checks of the individual Pallas kernels vs references ---
    # MaxPool (3x3 / stride 2 / ceil_mode) on a small odd-sized input.
    xt = jax.random.normal(k1, (2, 9, 9, 32), jnp.float32).astype(jnp.bfloat16)
    ref_mp = jax.lax.reduce_window(xt.astype(jnp.float32), -jnp.inf, jax.lax.max,
                                   (1, 3, 3, 1), (1, 2, 2, 1), 'VALID')
    assert jnp.allclose(maxpool_3x3_s2_nhwc(xt).astype(jnp.float32), ref_mp)

    # LocalResponseNorm.
    xl = jax.random.normal(k2, (2, 5, 5, 96), jnp.float32).astype(jnp.bfloat16)
    got_lrn = lrn_nhwc(xl, _lrn_band(96)).astype(jnp.float32)
    assert jnp.allclose(got_lrn, _lrn_ref(xl.astype(jnp.float32)),
                        rtol=2e-2, atol=2e-2)

    # Tiled matmul (multi-k accumulator path).
    xm = jax.random.normal(k3, (16, 512), jnp.float32).astype(jnp.bfloat16)
    wm = (jax.random.normal(k4, (512, 256), jnp.float32) * 0.05).astype(jnp.bfloat16)
    bv = jax.random.normal(k5, (1, 256), jnp.float32)
    got_mm = matmul_bias_act(xm, wm, bv, relu=True, tm=8, tn=128, tk=256,
                             out_dtype=jnp.float32)
    ref_mm = jnp.maximum(jnp.dot(xm.astype(jnp.float32), wm.astype(jnp.float32),
                                 precision=jax.lax.Precision.HIGHEST) + bv, 0.0)
    assert jnp.allclose(got_mm, ref_mm, rtol=2e-2, atol=2e-2)

    # Implicit-GEMM slab conv: grouped 5x5 (conv2) and plain 3x3 (conv3).
    x2 = jax.random.normal(k6, (2, 27, 27, 96), jnp.float32).astype(jnp.bfloat16)
    got_c2 = conv_slab(pp, 'conv2', x2).astype(jnp.float32)
    ref_c2 = _conv_ref_nhwc(x2, params['conv2'][0], params['conv2'][1], 1, 2, 2)
    assert jnp.allclose(got_c2, ref_c2, rtol=3e-2, atol=3e-2)

    x3 = jax.random.normal(k6, (2, 13, 13, 256), jnp.float32).astype(jnp.bfloat16)
    got_c3 = conv_slab(pp, 'conv3', x3).astype(jnp.float32)
    ref_c3 = _conv_ref_nhwc(x3, params['conv3'][0], params['conv3'][1], 1, 1, 1)
    assert jnp.allclose(got_c3, ref_c3, rtol=3e-2, atol=3e-2)

    # --- full AlexNetCaffe forward ---
    # batch=2; 227x227 is what the Caffe-AlexNet feature stack implies
    # (pool5 output must be 256 x 6 x 6 to match fc6's 9216-dim input).
    x = jax.random.normal(kx, (2, 3, 227, 227), jnp.float32)
    out = jax.block_until_ready(alexnet_caffe_forward(pp, x))
    assert out.shape == (2, 100), out.shape
    assert bool(jnp.all(jnp.isfinite(out)))
    print("KERNEL_OK")
</pallas_src>

<mosaic_0001>
module attributes {stable_mosaic.version = 11 : i64} {
  func.func @_maxpool_slab_kernel(%arg0: i32, %arg1: memref<182x32xbf16, #tpu.memory_space<vmem>>, %arg2: memref<162x32xbf16, #tpu.memory_space<vmem>>) attributes {dimension_semantics = [#tpu.dimension_semantics<arbitrary>], iteration_bounds = array<i64: 1>, scalar_prefetch = 0 : i64, scratch_operands = 0 : i64, tpu.core_type = #tpu.core_type<tc>, window_params = [{pipeline_mode = #tpu.pipeline_mode<synchronous>, transform_indices = @transform_0, window_bounds = array<i64: 182, 32>}, {pipeline_mode = #tpu.pipeline_mode<synchronous>, transform_indices = @transform_1, window_bounds = array<i64: 162, 32>}]} {
    %c0 = arith.constant 0 : index
    %c0_0 = arith.constant 0 : index
    %0 = vector.load %arg1[%c0, %c0_0] : memref<182x32xbf16, #tpu.memory_space<vmem>>, vector<162x32xbf16>
    %c1 = arith.constant 1 : index
    %c0_1 = arith.constant 0 : index
    %1 = vector.load %arg1[%c1, %c0_1] : memref<182x32xbf16, #tpu.memory_space<vmem>>, vector<162x32xbf16>
    %2 = arith.maximumf %0, %1 : vector<162x32xbf16>
    %c2 = arith.constant 2 : index
    %c0_2 = arith.constant 0 : index
    %3 = vector.load %arg1[%c2, %c0_2] : memref<182x32xbf16, #tpu.memory_space<vmem>>, vector<162x32xbf16>
    %4 = arith.maximumf %2, %3 : vector<162x32xbf16>
    %c9 = arith.constant 9 : index
    %c0_3 = arith.constant 0 : index
    %5 = vector.load %arg1[%c9, %c0_3] : memref<182x32xbf16, #tpu.memory_space<vmem>>, vector<162x32xbf16>
    %6 = arith.maximumf %4, %5 : vector<162x32xbf16>
    %c10 = arith.constant 10 : index
    %c0_4 = arith.constant 0 : index
    %7 = vector.load %arg1[%c10, %c0_4] : memref<182x32xbf16, #tpu.memory_space<vmem>>, vector<162x32xbf16>
    %8 = arith.maximumf %6, %7 : vector<162x32xbf16>
    %c11 = arith.constant 11 : index
    %c0_5 = arith.constant 0 : index
    %9 = vector.load %arg1[%c11, %c0_5] : memref<182x32xbf16, #tpu.memory_space<vmem>>, vector<162x32xbf16>
    %10 = arith.maximumf %8, %9 : vector<162x32xbf16>
    %c18 = arith.constant 18 : index
    %c0_6 = arith.constant 0 : index
    %11 = vector.load %arg1[%c18, %c0_6] : memref<182x32xbf16, #tpu.memory_space<vmem>>, vector<162x32xbf16>
    %12 = arith.maximumf %10, %11 : vector<162x32xbf16>
    %c19 = arith.constant 19 : index
    %c0_7 = arith.constant 0 : index
    %13 = vector.load %arg1[%c19, %c0_7] : memref<182x32xbf16, #tpu.memory_space<vmem>>, vector<162x32xbf16>
    %14 = arith.maximumf %12, %13 : vector<162x32xbf16>
    %c20 = arith.constant 20 : index
    %c0_8 = arith.constant 0 : index
    %15 = vector.load %arg1[%c20, %c0_8] : memref<182x32xbf16, #tpu.memory_space<vmem>>, vector<162x32xbf16>
    %16 = arith.maximumf %14, %15 : vector<162x32xbf16>
    %c0_9 = arith.constant 0 : index
    %c0_10 = arith.constant 0 : index
    %17 = vector.load %arg2[%c0_9, %c0_10] : memref<162x32xbf16, #tpu.memory_space<vmem>>, vector<162x32xbf16>
    tpu.vector_store %arg2[%c0_9, %c0_10], %16 {strides = array<i32>} : memref<162x32xbf16, #tpu.memory_space<vmem>>, vector<162x32xbf16>,
    return
  }
  func.func @transform_0(%arg0: i32) -> (i32, i32) {
    %c0_i32 = arith.constant 0 : i32
    %c0_i32_0 = arith.constant 0 : i32
    %c0_i32_1 = arith.constant 0 : i32
    return %c0_i32, %c0_i32_0 : i32, i32
  }
  func.func @transform_1(%arg0: i32) -> (i32, i32) {
    %c0_i32 = arith.constant 0 : i32
    %c0_i32_0 = arith.constant 0 : i32
    %c0_i32_1 = arith.constant 0 : i32
    return %c0_i32, %c0_i32_0 : i32, i32
  }
}

</mosaic_0001>

<bundles_post_ra>
// kernel: tpu_custom_call.1
= control target key start
LH: loop header
LB: loop body
LE: loop exit
PB: predicated region body
PF: predicated region fallthrough
CT: control target
= control target key end

     0   :  { %vm73_vm0 = vcmask 1046528   ;;  %vm202_vm1 = vcmask 1045504   ;;  %vm483_vm2 = vcmask 1044480   ;;  %vm770_vm3 = vcmask 1043456   ;;  %s1261_s0 = inlined_call_operand.vmem [shape: bf16[182,32], index: 0, kind: input, shape index: {}]   ;;  %s1262_s1 = inlined_call_operand.vmem [shape: bf16[162,32], index: 1, kind: output, shape index: {}]  }
   0x1   :  { %v903_v0 = vld [vmem:[%s1261_s0] sm:$0xff]   ;;  %v942_v1 = vld [vmem:[%s1261_s0 + $0x8] sm:$0xff]   ;;  %v943_v26 = vld [vmem:[%s1261_s0 + $0x10] sm:$0xff]   ;;  %vm875_vm4 = vcmask 257024   ;;  %vm896_vm5 = vcmask 253952  }
   0x2   :  { %v178_v2 = vld [vmem:[%s1261_s0] sm:$0xe]  ;;  %v904_v3 = vunpack.c.l.bf16 %v903_v0  ;;  %v905_v4 = vunpack.c.h.bf16 %v903_v0  ;;  %v908_v5 = vunpack.c.l.bf16 %v942_v1  ;;  %v970_v6 = vunpack.c.h.bf16 %v942_v1  ;;  %v383_v7 = vld [vmem:[%s1261_s0 + $0x4] sm:$0xe]  ;;  %v588_v8 = vld [vmem:[%s1261_s0 + $0x8] sm:$0xe] }
   0x3   :  { %v746_v9 = vld [vmem:[%s1261_s0 + $0x8] sm:$0xc]  ;;  %v200_v10 = vunpack.c.l.bf16 %v178_v2  ;;  %v405_v11 = vunpack.c.l.bf16 %v383_v7  ;;  %v612_v12 = vunpack.c.l.bf16 %v588_v8  ;;  %v912_v38 = vunpack.c.l.bf16 %v943_v26  ;;  %v944_v55 = vld [vmem:[%s1261_s0 + $0x18] sm:$0xff]  }
   0x4   :  { %v768_v13 = vunpack.c.l.bf16 %v746_v9  ;;  %v74_v14 = vrot.slane %v904_v3, 1  ;;  %v75_v15 = vrot.slane %v905_v4, 1  ;;  %v77_v16 = vrot.slane %v908_v5, 1 }
   0x5   :  { %v204_v17 = vrot.slane %v905_v4, 2  ;;  %v203_v18 = vrot.slane %v200_v10, 2  ;;  %v206_v19 = vrot.slane %v908_v5, 2  ;;  %v208_v20 = vrot.slane %v970_v6, 2 }
   0x6   :  { %v407_v21 = vrot.slane %v405_v11, 2  ;;  %v76_v22 = vsel %vm73_vm0, %v74_v14, %v75_v15  ;;  %v78_v23 = vsel %vm73_vm0, %v75_v15, %v77_v16  ;;  %v484_v24 = vrot.slane %v405_v11, 3 }
   0x7   :  { %v485_v25 = vrot.slane %v908_v5, 3  ;;  %v136_v27 = vmax.f32 %v904_v3, %v76_v22  ;;  %v137_v28 = vmax.f32 %v905_v4, %v78_v23  ;;  %v205_v29 = vsel %vm202_vm1, %v203_v18, %v204_v17 }
   0x8   :  { %v408_v30 = vsel %vm202_vm1, %v407_v21, %v206_v19  ;;  %v487_v32 = vrot.slane %v970_v6, 3  ;;  %v618_v33 = vrot.slane %v612_v12, 2  ;;  %v694_v34 = vrot.slane %v612_v12, 3 }
   0x9   :  { %v486_v31 = vsel %vm483_vm2, %v484_v24, %v485_v25  ;;  %v265_v35 = vmax.f32 %v136_v27, %v205_v29  ;;  %v771_v36 = vrot.slane %v768_v13, 4  ;;  %v772_v37 = vrot.slane %v970_v6, 4 }
   0xa   :  { %v619_v39 = vsel %vm202_vm1, %v618_v33, %v208_v20  ;;  %v695_v40 = vsel %vm483_vm2, %v694_v34, %v487_v32  ;;  %v79_v41 = vrot.slane %v970_v6, 1  ;;  %v207_v42 = vsel %vm202_vm1, %v204_v17, %v206_v19 }
   0xb   :  { %v341_v43 = vmax.f32 %v265_v35, %v78_v23  ;;  %v773_v44 = vsel %vm770_vm3, %v771_v36, %v772_v37  ;;  %v81_v45 = vrot.slane %v912_v38, 1  ;;  %v209_v46 = vsel %vm202_vm1, %v206_v19, %v208_v20 }
   0xc   :  { %v80_v47 = vsel %vm73_vm0, %v77_v16, %v79_v41  ;;  %v210_v48 = vrot.slane %v912_v38, 2  ;;  %v266_v49 = vmax.f32 %v137_v28, %v207_v42  ;;  %v488_v50 = vsel %vm483_vm2, %v485_v25, %v487_v32 }
   0xd   :  { %v417_v51 = vmax.f32 %v341_v43, %v408_v30  ;;  %v82_v52 = vsel %vm73_vm0, %v79_v41, %v81_v45  ;;  %v138_v53 = vmax.f32 %v908_v5, %v80_v47  ;;  %v489_v54 = vrot.slane %v912_v38, 3 }
   0xe   :  { %v139_v56 = vmax.f32 %v970_v6, %v82_v52  ;;  %v211_v57 = vsel %vm202_vm1, %v208_v20, %v210_v48  ;;  %v342_v58 = vmax.f32 %v266_v49, %v80_v47  ;;  %v774_v59 = vrot.slane %v912_v38, 4 }
   0xf   :  { %v546_v60 = vmax.f32 %v417_v51, %v486_v31  ;;  %v267_v61 = vmax.f32 %v138_v53, %v209_v46  ;;  %v490_v62 = vsel %vm483_vm2, %v487_v32, %v489_v54  ;;  %v913_v63 = vunpack.c.h.bf16 %v943_v26 }
  0x10   :  { %v268_v0 = vmax.f32 %v139_v56, %v211_v57  ;;  %v418_v1 = vmax.f32 %v342_v58, %v209_v46  ;;  %v775_v2 = vsel %vm770_vm3, %v772_v37, %v774_v59  ;;  %v1008_v3 = vunpack.c.l.bf16 %v944_v55 }
  0x11   :  { %v628_v4 = vmax.f32 %v546_v60, %v619_v39  ;;  %v343_v5 = vmax.f32 %v267_v61, %v82_v52  ;;  %v83_v7 = vrot.slane %v913_v63, 1  ;;  %v212_v8 = vrot.slane %v913_v63, 2 }
  0x12   :  { %v547_v6 = vmax.f32 %v418_v1, %v488_v50  ;;  %v491_v9 = vrot.slane %v913_v63, 3  ;;  %v776_v10 = vrot.slane %v913_v63, 4  ;;  %v85_v11 = vrot.slane %v1008_v3, 1 }
  0x13   :  { %v704_v12 = vmax.f32 %v628_v4, %v695_v40  ;;  %v419_v13 = vmax.f32 %v343_v5, %v211_v57  ;;  %v84_v14 = vsel %vm73_vm0, %v81_v45, %v83_v7  ;;  %v213_v15 = vsel %vm202_vm1, %v210_v48, %v212_v8 }
  0x14   :  { %v629_v16 = vmax.f32 %v547_v6, %v211_v57  ;;  %v140_v17 = vmax.f32 %v912_v38, %v84_v14  ;;  %v344_v18 = vmax.f32 %v268_v0, %v84_v14  ;;  %v492_v19 = vsel %vm483_vm2, %v489_v54, %v491_v9 }
  0x15   :  { %v833_v20 = vmax.f32 %v704_v12, %v773_v44  ;;  %v548_v21 = vmax.f32 %v419_v13, %v490_v62  ;;  %v777_v22 = vsel %vm770_vm3, %v774_v59, %v776_v10  ;;  %v86_v23 = vsel %vm73_vm0, %v83_v7, %v85_v11  ;;  %v945_v44 = vld [vmem:[%s1261_s0 + $0x20] sm:$0xff]  }
  0x16   :  { %v705_v24 = vmax.f32 %v629_v16, %v490_v62  ;;  %v269_v25 = vmax.f32 %v140_v17, %v213_v15  ;;  %v420_v26 = vmax.f32 %v344_v18, %v213_v15  ;;  %v141_v27 = vmax.f32 %v913_v63, %v86_v23 }
  0x17   :  { %v854_v28 = vpack.c.bf16 %v833_v20, %v833_v20  ;;  %v630_v29 = vmax.f32 %v548_v21, %v213_v15  ;;  %v214_v30 = vrot.slane %v1008_v3, 2  ;;  %v493_v31 = vrot.slane %v1008_v3, 3 }
  0x18   :  { %v834_v32 = vmax.f32 %v705_v24, %v775_v2  ;;  %v549_v33 = vmax.f32 %v420_v26, %v492_v19  ;;  %v345_v34 = vmax.f32 %v269_v25, %v86_v23  ;;  %v778_v35 = vrot.slane %v1008_v3, 4 }
  0x19   :  { %876 = vst.msk [vmem:[%s1262_s1] sm:$0xf] %vm875_vm4, %v854_v28  ;;  %v706_v36 = vmax.f32 %v630_v29, %v492_v19  ;;  %v215_v37 = vsel %vm202_vm1, %v212_v8, %v214_v30  ;;  %v494_v38 = vsel %vm483_vm2, %v491_v9, %v493_v31  ;;  %v917_v39 = vunpack.c.h.bf16 %v944_v55 }
  0x1a   :  { %v855_v40 = vpack.c.bf16 %v834_v32, %v834_v32  ;;  %v270_v41 = vmax.f32 %v141_v27, %v215_v37  ;;  %v421_v42 = vmax.f32 %v345_v34, %v215_v37  ;;  %v631_v43 = vmax.f32 %v549_v33, %v215_v37 }
  0x1b   :  { %v835_v45 = vmax.f32 %v706_v36, %v777_v22  ;;  %v779_v46 = vsel %vm770_vm3, %v776_v10, %v778_v35  ;;  %v87_v47 = vrot.slane %v917_v39, 1  ;;  %v216_v48 = vrot.slane %v917_v39, 2 }
  0x1c   :  { %877 = vst.msk [vmem:[%s1262_s1 + $0x4] sm:$0xf] %vm875_vm4, %v855_v40  ;;  %v550_v49 = vmax.f32 %v421_v42, %v494_v38  ;;  %v707_v50 = vmax.f32 %v631_v43, %v494_v38  ;;  %v495_v51 = vrot.slane %v917_v39, 3  ;;  %v780_v52 = vrot.slane %v917_v39, 4 }
  0x1d   :  { %v856_v53 = vpack.c.bf16 %v835_v45, %v835_v45  ;;  %v88_v54 = vsel %vm73_vm0, %v85_v11, %v87_v47  ;;  %v217_v55 = vsel %vm202_vm1, %v214_v30, %v216_v48  ;;  %v920_v56 = vunpack.c.l.bf16 %v945_v44 }
  0x1e   :  { %v836_v57 = vmax.f32 %v707_v50, %v779_v46  ;;  %v142_v58 = vmax.f32 %v1008_v3, %v88_v54  ;;  %v346_v59 = vmax.f32 %v270_v41, %v88_v54  ;;  %v496_v60 = vsel %vm483_vm2, %v493_v31, %v495_v51  ;;  %v946_v3 = vld [vmem:[%s1261_s0 + $0x28] sm:$0xff]  }
  0x1f   :  { %878 = vst.msk [vmem:[%s1262_s1 + $0x8] sm:$0xf] %vm875_vm4, %v856_v53  ;;  %v632_v61 = vmax.f32 %v550_v49, %v217_v55  ;;  %v781_v62 = vsel %vm770_vm3, %v778_v35, %v780_v52  ;;  %v89_v63 = vrot.slane %v920_v56, 1  ;;  %v218_v0 = vrot.slane %v920_v56, 2 }
  0x20   :  { %v857_v1 = vpack.c.bf16 %v836_v57, %v836_v57  ;;  %v271_v2 = vmax.f32 %v142_v58, %v217_v55  ;;  %v422_v4 = vmax.f32 %v346_v59, %v217_v55  ;;  %v497_v5 = vrot.slane %v920_v56, 3  ;;  %v947_v58 = vld [vmem:[%s1261_s0 + $0x30] sm:$0xff]  }
  0x21   :  { %v708_v7 = vmax.f32 %v632_v61, %v496_v60  ;;  %v90_v8 = vsel %vm73_vm0, %v87_v47, %v89_v63  ;;  %v219_v6 = vsel %vm202_vm1, %v216_v48, %v218_v0  ;;  %v782_v9 = vrot.slane %v920_v56, 4 }
  0x22   :  { %879 = vst.msk [vmem:[%s1262_s1 + $0xc] sm:$0xf] %vm875_vm4, %v857_v1  ;;  %v551_v10 = vmax.f32 %v422_v4, %v496_v60  ;;  %v143_v11 = vmax.f32 %v917_v39, %v90_v8  ;;  %v347_v12 = vmax.f32 %v271_v2, %v90_v8  ;;  %v498_v13 = vsel %vm483_vm2, %v495_v51, %v497_v5 }
  0x23   :  { %v837_v14 = vmax.f32 %v708_v7, %v781_v62  ;;  %v783_v15 = vsel %vm770_vm3, %v780_v52, %v782_v9  ;;  %v921_v16 = vunpack.c.h.bf16 %v945_v44  ;;  %v924_v17 = vunpack.c.l.bf16 %v946_v3 }
  0x24   :  { %v272_v18 = vmax.f32 %v143_v11, %v219_v6  ;;  %v423_v19 = vmax.f32 %v347_v12, %v219_v6  ;;  %v633_v20 = vmax.f32 %v551_v10, %v219_v6  ;;  %v1053_v21 = vunpack.c.h.bf16 %v946_v3 }
  0x25   :  { %v858_v22 = vpack.c.bf16 %v837_v14, %v837_v14  ;;  %v91_v23 = vrot.slane %v921_v16, 1  ;;  %v220_v24 = vrot.slane %v921_v16, 2  ;;  %v499_v25 = vrot.slane %v921_v16, 3 }
  0x26   :  { %v552_v26 = vmax.f32 %v423_v19, %v498_v13  ;;  %v709_v27 = vmax.f32 %v633_v20, %v498_v13  ;;  %v784_v28 = vrot.slane %v921_v16, 4  ;;  %v93_v29 = vrot.slane %v924_v17, 1 }
  0x27   :  { %880 = vst.msk [vmem:[%s1262_s1 + $0x10] sm:$0xf] %vm875_vm4, %v858_v22  ;;  %v92_v30 = vsel %vm73_vm0, %v89_v63, %v91_v23  ;;  %v221_v31 = vsel %vm202_vm1, %v218_v0, %v220_v24  ;;  %v500_v32 = vsel %vm483_vm2, %v497_v5, %v499_v25  ;;  %v222_v33 = vrot.slane %v924_v17, 2  ;;  %v948_v63 = vld [vmem:[%s1261_s0 + $0x38] sm:$0xff]  }
  0x28   :  { %v838_v34 = vmax.f32 %v709_v27, %v783_v15  ;;  %v144_v35 = vmax.f32 %v920_v56, %v92_v30  ;;  %v348_v36 = vmax.f32 %v272_v18, %v92_v30  ;;  %v634_v37 = vmax.f32 %v552_v26, %v221_v31 }
  0x29   :  { %v785_v38 = vsel %vm770_vm3, %v782_v9, %v784_v28  ;;  %v94_v39 = vsel %vm73_vm0, %v91_v23, %v93_v29  ;;  %v223_v40 = vsel %vm202_vm1, %v220_v24, %v222_v33  ;;  %v501_v41 = vrot.slane %v924_v17, 3 }
  0x2a   :  { %v859_v42 = vpack.c.bf16 %v838_v34, %v838_v34  ;;  %v273_v43 = vmax.f32 %v144_v35, %v221_v31  ;;  %v424_v44 = vmax.f32 %v348_v36, %v221_v31  ;;  %v710_v45 = vmax.f32 %v634_v37, %v500_v32 }
  0x2b   :  { %v145_v46 = vmax.f32 %v921_v16, %v94_v39  ;;  %v502_v47 = vsel %vm483_vm2, %v499_v25, %v501_v41  ;;  %v786_v48 = vrot.slane %v924_v17, 4  ;;  %v95_v49 = vrot.slane %v1053_v21, 1 }
  0x2c   :  { %881 = vst.msk [vmem:[%s1262_s1 + $0x14] sm:$0xf] %vm875_vm4, %v859_v42  ;;  %v553_v50 = vmax.f32 %v424_v44, %v500_v32  ;;  %v839_v51 = vmax.f32 %v710_v45, %v785_v38  ;;  %v349_v52 = vmax.f32 %v273_v43, %v94_v39  ;;  %v224_v53 = vrot.slane %v1053_v21, 2 }
  0x2d   :  { %v274_v54 = vmax.f32 %v145_v46, %v223_v40  ;;  %v787_v55 = vsel %vm770_vm3, %v784_v28, %v786_v48  ;;  %v96_v56 = vsel %vm73_vm0, %v93_v29, %v95_v49  ;;  %v503_v57 = vrot.slane %v1053_v21, 3 }
  0x2e   :  { %v860_v59 = vpack.c.bf16 %v839_v51, %v839_v51  ;;  %v425_v60 = vmax.f32 %v349_v52, %v223_v40  ;;  %v635_v61 = vmax.f32 %v553_v50, %v223_v40  ;;  %v146_v62 = vmax.f32 %v924_v17, %v96_v56 }
  0x2f   :  { %v225_v0 = vsel %vm202_vm1, %v222_v33, %v224_v53  ;;  %v350_v1 = vmax.f32 %v274_v54, %v96_v56  ;;  %v504_v2 = vsel %vm483_vm2, %v501_v41, %v503_v57  ;;  %v788_v4 = vrot.slane %v1053_v21, 4 }
  0x30   :  { %882 = vst.msk [vmem:[%s1262_s1 + $0x18] sm:$0xf] %vm875_vm4, %v860_v59  ;;  %v554_v5 = vmax.f32 %v425_v60, %v502_v47  ;;  %v711_v3 = vmax.f32 %v635_v61, %v502_v47  ;;  %v275_v7 = vmax.f32 %v146_v62, %v225_v0  ;;  %v928_v8 = vunpack.c.l.bf16 %v947_v58 }
  0x31   :  { %v426_v6 = vmax.f32 %v350_v1, %v225_v0  ;;  %v789_v9 = vsel %vm770_vm3, %v786_v48, %v788_v4  ;;  %v929_v10 = vunpack.c.h.bf16 %v947_v58  ;;  %v1089_v11 = vunpack.c.l.bf16 %v948_v63 }
  0x32   :  { %v840_v12 = vmax.f32 %v711_v3, %v787_v55  ;;  %v636_v13 = vmax.f32 %v554_v5, %v225_v0  ;;  %v97_v14 = vrot.slane %v928_v8, 1  ;;  %v226_v15 = vrot.slane %v928_v8, 2 }
  0x33   :  { %v555_v16 = vmax.f32 %v426_v6, %v504_v2  ;;  %v505_v17 = vrot.slane %v928_v8, 3  ;;  %v790_v18 = vrot.slane %v928_v8, 4  ;;  %v99_v19 = vrot.slane %v929_v10, 1 }
  0x34   :  { %v861_v20 = vpack.c.bf16 %v840_v12, %v840_v12  ;;  %v712_v22 = vmax.f32 %v636_v13, %v504_v2  ;;  %v98_v23 = vsel %vm73_vm0, %v95_v49, %v97_v14  ;;  %v227_v24 = vsel %vm202_vm1, %v224_v53, %v226_v15 }
  0x35   :  { %v147_v25 = vmax.f32 %v1053_v21, %v98_v23  ;;  %v351_v26 = vmax.f32 %v275_v7, %v98_v23  ;;  %v506_v27 = vsel %vm483_vm2, %v503_v57, %v505_v17  ;;  %v637_v28 = vmax.f32 %v555_v16, %v227_v24 }
  0x36   :  { %883 = vst.msk [vmem:[%s1262_s1 + $0x1c] sm:$0xf] %vm875_vm4, %v861_v20  ;;  %v841_v29 = vmax.f32 %v712_v22, %v789_v9  ;;  %v791_v30 = vsel %vm770_vm3, %v788_v4, %v790_v18  ;;  %v100_v31 = vsel %vm73_vm0, %v97_v14, %v99_v19  ;;  %v228_v32 = vrot.slane %v929_v10, 2 }
  0x37   :  { %v276_v33 = vmax.f32 %v147_v25, %v227_v24  ;;  %v427_v34 = vmax.f32 %v351_v26, %v227_v24  ;;  %v713_v35 = vmax.f32 %v637_v28, %v506_v27  ;;  %v148_v36 = vmax.f32 %v928_v8, %v100_v31 }
  0x38   :  { %v862_v21 = vpack.c.bf16 %v841_v29, %v841_v29  ;;  %v229_v37 = vsel %vm202_vm1, %v226_v15, %v228_v32  ;;  %v507_v38 = vrot.slane %v929_v10, 3  ;;  %v792_v39 = vrot.slane %v929_v10, 4 }
  0x39   :  { %v556_v40 = vmax.f32 %v427_v34, %v506_v27  ;;  %v842_v41 = vmax.f32 %v713_v35, %v791_v30  ;;  %v277_v42 = vmax.f32 %v148_v36, %v229_v37  ;;  %v352_v43 = vmax.f32 %v276_v33, %v100_v31 }
  0x3a   :  { %884 = vst.msk [vmem:[%s1262_s1 + $0x20] sm:$0xf] %vm875_vm4, %v862_v21  ;;  %v508_v44 = vsel %vm483_vm2, %v505_v17, %v507_v38  ;;  %v793_v45 = vsel %vm770_vm3, %v790_v18, %v792_v39  ;;  %v101_v46 = vrot.slane %v1089_v11, 1  ;;  %v230_v47 = vrot.slane %v1089_v11, 2 }
  0x3b   :  { %v863_v48 = vpack.c.bf16 %v842_v41, %v842_v41  ;;  %v428_v49 = vmax.f32 %v352_v43, %v229_v37  ;;  %v638_v50 = vmax.f32 %v556_v40, %v229_v37  ;;  %v509_v51 = vrot.slane %v1089_v11, 3  ;;  %v950_v41 = vld [vmem:[%s1261_s0 + $0x48] sm:$0xff]  }
  0x3c   :  { %v102_v52 = vsel %vm73_vm0, %v99_v19, %v101_v46  ;;  %v231_v53 = vsel %vm202_vm1, %v228_v32, %v230_v47  ;;  %v794_v54 = vrot.slane %v1089_v11, 4  ;;  %v933_v55 = vunpack.c.h.bf16 %v948_v63  ;;  %v949_v63 = vld [vmem:[%s1261_s0 + $0x40] sm:$0xff]  }
  0x3d   :  { %885 = vst.msk [vmem:[%s1262_s1 + $0x24] sm:$0xf] %vm875_vm4, %v863_v48  ;;  %v557_v56 = vmax.f32 %v428_v49, %v508_v44  ;;  %v714_v57 = vmax.f32 %v638_v50, %v508_v44  ;;  %v149_v58 = vmax.f32 %v929_v10, %v102_v52  ;;  %v353_v59 = vmax.f32 %v277_v42, %v102_v52 }
  0x3e   :  { %v510_v60 = vsel %vm483_vm2, %v507_v38, %v509_v51  ;;  %v795_v61 = vsel %vm770_vm3, %v792_v39, %v794_v54  ;;  %v103_v62 = vrot.slane %v933_v55, 1  ;;  %v232_v0 = vrot.slane %v933_v55, 2 }
  0x3f   :  { %v843_v1 = vmax.f32 %v714_v57, %v793_v45  ;;  %v278_v2 = vmax.f32 %v149_v58, %v231_v53  ;;  %v429_v4 = vmax.f32 %v353_v59, %v231_v53  ;;  %v639_v5 = vmax.f32 %v557_v56, %v231_v53 }
  0x40   :  { %v104_v3 = vsel %vm73_vm0, %v101_v46, %v103_v62  ;;  %v233_v7 = vsel %vm202_vm1, %v230_v47, %v232_v0  ;;  %v511_v8 = vrot.slane %v933_v55, 3  ;;  %v796_v6 = vrot.slane %v933_v55, 4  ;;  %v307_v46 = vld [vmem:[%s1261_s0 + $0x50] sm:$0xff]  }
  0x41   :  { %v864_v9 = vpack.c.bf16 %v843_v1, %v843_v1  ;;  %v558_v10 = vmax.f32 %v429_v4, %v510_v60  ;;  %v715_v12 = vmax.f32 %v639_v5, %v510_v60  ;;  %v150_v13 = vmax.f32 %v1089_v11, %v104_v3 }
  0x42   :  { %v354_v14 = vmax.f32 %v278_v2, %v104_v3  ;;  %v512_v15 = vsel %vm483_vm2, %v509_v51, %v511_v8  ;;  %v797_v16 = vsel %vm770_vm3, %v794_v54, %v796_v6  ;;  %v936_v17 = vunpack.c.l.bf16 %v949_v63 }
  0x43   :  { %886 = vst.msk [vmem:[%s1262_s1 + $0x28] sm:$0xf] %vm875_vm4, %v864_v9  ;;  %v844_v18 = vmax.f32 %v715_v12, %v795_v61  ;;  %v279_v19 = vmax.f32 %v150_v13, %v233_v7  ;;  %v640_v20 = vmax.f32 %v558_v10, %v233_v7  ;;  %v1132_v22 = vunpack.c.h.bf16 %v949_v63 }
  0x44   :  { %v430_v23 = vmax.f32 %v354_v14, %v233_v7  ;;  %v105_v24 = vrot.slane %v936_v17, 1  ;;  %v234_v25 = vrot.slane %v936_v17, 2  ;;  %v513_v11 = vrot.slane %v936_v17, 3 }
  0x45   :  { %v865_v26 = vpack.c.bf16 %v844_v18, %v844_v18  ;;  %v716_v27 = vmax.f32 %v640_v20, %v512_v15  ;;  %v798_v28 = vrot.slane %v936_v17, 4  ;;  %v107_v29 = vrot.slane %v1132_v22, 1 }
  0x46   :  { %v559_v30 = vmax.f32 %v430_v23, %v512_v15  ;;  %v106_v31 = vsel %vm73_vm0, %v103_v62, %v105_v24  ;;  %v235_v32 = vsel %vm202_vm1, %v232_v0, %v234_v25  ;;  %v514_v33 = vsel %vm483_vm2, %v511_v8, %v513_v11 }
  0x47   :  { %887 = vst.msk [vmem:[%s1262_s1 + $0x2c] sm:$0xf] %vm875_vm4, %v865_v26  ;;  %v845_v34 = vmax.f32 %v716_v27, %v797_v16  ;;  %v151_v35 = vmax.f32 %v933_v55, %v106_v31  ;;  %v355_v36 = vmax.f32 %v279_v19, %v106_v31  ;;  %v799_v21 = vsel %vm770_vm3, %v796_v6, %v798_v28 }
  0x48   :  { %v641_v37 = vmax.f32 %v559_v30, %v235_v32  ;;  %v108_v38 = vsel %vm73_vm0, %v105_v24, %v107_v29  ;;  %v236_v39 = vrot.slane %v1132_v22, 2  ;;  %v515_v40 = vrot.slane %v1132_v22, 3 }
  0x49   :  { %v866_v42 = vpack.c.bf16 %v845_v34, %v845_v34  ;;  %v280_v43 = vmax.f32 %v151_v35, %v235_v32  ;;  %v431_v44 = vmax.f32 %v355_v36, %v235_v32  ;;  %v152_v45 = vmax.f32 %v936_v17, %v108_v38 }
  0x4a   :  { %v717_v47 = vmax.f32 %v641_v37, %v514_v33  ;;  %v237_v48 = vsel %vm202_vm1, %v234_v25, %v236_v39  ;;  %v516_v49 = vsel %vm483_vm2, %v513_v11, %v515_v40  ;;  %v800_v50 = vrot.slane %v1132_v22, 4 }
  0x4b   :  { %888 = vst.msk [vmem:[%s1262_s1 + $0x30] sm:$0xf] %vm875_vm4, %v866_v42  ;;  %v560_v51 = vmax.f32 %v431_v44, %v514_v33  ;;  %v281_v52 = vmax.f32 %v152_v45, %v237_v48  ;;  %v356_v53 = vmax.f32 %v280_v43, %v108_v38  ;;  %v940_v54 = vunpack.c.l.bf16 %v950_v41  ;;  %v308_v43 = vld [vmem:[%s1261_s0 + $0x54] sm:$0x3] }
  0x4c   :  { %v846_v55 = vmax.f32 %v717_v47, %v799_v21  ;;  %v801_v56 = vsel %vm770_vm3, %v798_v28, %v800_v50  ;;  %v1160_v57 = vunpack.c.h.bf16 %v950_v41  ;;  %v1162_v58 = vunpack.c.l.bf16 %v307_v46 }
  0x4d   :  { %v432_v59 = vmax.f32 %v356_v53, %v237_v48  ;;  %v642_v60 = vmax.f32 %v560_v51, %v237_v48  ;;  %v109_v61 = vrot.slane %v940_v54, 1  ;;  %v238_v62 = vrot.slane %v940_v54, 2 }
  0x4e   :  { %v867_v0 = vpack.c.bf16 %v846_v55, %v846_v55  ;;  %v517_v1 = vrot.slane %v940_v54, 3  ;;  %v802_v2 = vrot.slane %v940_v54, 4  ;;  %v1165_v4 = vrot.slane %v1160_v57, 1 }
  0x4f   :  { %v561_v5 = vmax.f32 %v432_v59, %v516_v49  ;;  %v718_v63 = vmax.f32 %v642_v60, %v516_v49  ;;  %v110_v3 = vsel %vm73_vm0, %v107_v29, %v109_v61  ;;  %v239_v7 = vsel %vm202_vm1, %v236_v39, %v238_v62  ;;  %v29_v39 = vld [vmem:[%s1261_s0 + $0x50] sm:$0x3] }
  0x50   :  { %889 = vst.msk [vmem:[%s1262_s1 + $0x34] sm:$0xf] %vm875_vm4, %v867_v0  ;;  %v153_v8 = vmax.f32 %v1132_v22, %v110_v3  ;;  %v357_v6 = vmax.f32 %v281_v52, %v110_v3  ;;  %v518_v9 = vsel %vm483_vm2, %v515_v40, %v517_v1  ;;  %v803_v10 = vsel %vm770_vm3, %v800_v50, %v802_v2  ;;  %v459_v52 = vld [vmem:[%s1261_s0 + $0x54] sm:$0x7] }
  0x51   :  { %v847_v12 = vmax.f32 %v718_v63, %v801_v56  ;;  %v643_v13 = vmax.f32 %v561_v5, %v239_v7  ;;  %v112_v14 = vsel %vm73_vm0, %v109_v61, %v1165_v4  ;;  %v1179_v15 = vrot.slane %v1160_v57, 2 }
  0x52   :  { %v282_v16 = vmax.f32 %v153_v8, %v239_v7  ;;  %v433_v17 = vmax.f32 %v357_v6, %v239_v7  ;;  %v154_v18 = vmax.f32 %v940_v54, %v112_v14  ;;  %v519_v19 = vrot.slane %v1160_v57, 3  ;;  %v670_v6 = vld [vmem:[%s1261_s0 + $0x58] sm:$0x7] }
  0x53   :  { %v868_v20 = vpack.c.bf16 %v847_v12, %v847_v12  ;;  %v719_v22 = vmax.f32 %v643_v13, %v518_v9  ;;  %v241_v23 = vsel %vm202_vm1, %v238_v62, %v1179_v15  ;;  %v804_v24 = vrot.slane %v1160_v57, 4 }
  0x54   :  { %v562_v25 = vmax.f32 %v433_v17, %v518_v9  ;;  %v283_v11 = vmax.f32 %v154_v18, %v241_v23  ;;  %v358_v26 = vmax.f32 %v282_v16, %v112_v14  ;;  %v520_v27 = vsel %vm483_vm2, %v517_v1, %v519_v19  ;;  %v28_v9 = vld [vmem:[%s1261_s0 + $0x50] sm:$0x1] }
  0x55   :  { %890 = vst.msk [vmem:[%s1262_s1 + $0x38] sm:$0xf] %vm875_vm4, %v868_v20  ;;  %v848_v28 = vmax.f32 %v719_v22, %v803_v10  ;;  %v805_v29 = vsel %vm770_vm3, %v802_v2, %v804_v24  ;;  %v334_v30 = vrot.slane %v1162_v58, 1  ;;  %v409_v31 = vrot.slane %v1162_v58, 2 }
  0x56   :  { %v434_v32 = vmax.f32 %v358_v26, %v241_v23  ;;  %v644_v33 = vmax.f32 %v562_v25, %v241_v23  ;;  %v521_v34 = vrot.slane %v1162_v58, 3  ;;  %v806_v35 = vrot.slane %v1162_v58, 4  ;;  %v590_v58 = vld [vmem:[%s1261_s0 + $0x58] sm:$0x3] }
  0x57   :  { %v869_v36 = vpack.c.bf16 %v848_v28, %v848_v28  ;;  %v335_v21 = vsel %vm73_vm0, %v1165_v4, %v334_v30  ;;  %v410_v37 = vsel %vm202_vm1, %v1179_v15, %v409_v31  ;;  %v1199_v38 = vunpack.c.h.bf16 %v307_v46 }
  0x58   :  { %v563_v40 = vmax.f32 %v434_v32, %v520_v27  ;;  %v720_v41 = vmax.f32 %v644_v33, %v520_v27  ;;  %v359_v42 = vmax.f32 %v283_v11, %v335_v21  ;;  %v522_v44 = vsel %vm483_vm2, %v519_v19, %v521_v34 }
  0x59   :  { %891 = vst.msk [vmem:[%s1262_s1 + $0x3c] sm:$0xf] %vm875_vm4, %v869_v36  ;;  %v807_v45 = vsel %vm770_vm3, %v804_v24, %v806_v35  ;;  %v620_v46 = vrot.slane %v1199_v38, 2  ;;  %v696_v47 = vrot.slane %v1199_v38, 3  ;;  %v51_v51 = vunpack.c.l.bf16 %v29_v39 }
  0x5a   :  { %v849_v48 = vmax.f32 %v720_v41, %v805_v29  ;;  %v435_v49 = vmax.f32 %v359_v42, %v410_v37  ;;  %v645_v50 = vmax.f32 %v563_v40, %v410_v37  ;;  %v808_v55 = vrot.slane %v1199_v38, 4 }
  0x5b   :  { %v621_v53 = vsel %vm202_vm1, %v409_v31, %v620_v46  ;;  %v697_v54 = vsel %vm483_vm2, %v521_v34, %v696_v47  ;;  %v331_v56 = vunpack.c.l.bf16 %v308_v43  ;;  %v113_v62 = vrot.slane %v51_v51, 1 }
  0x5c   :  { %v870_v59 = vpack.c.bf16 %v849_v48, %v849_v48  ;;  %v564_v60 = vmax.f32 %v435_v49, %v522_v44  ;;  %v721_v61 = vmax.f32 %v645_v50, %v522_v44  ;;  %v242_v0 = vrot.slane %v51_v51, 2 }
  0x5d   :  { %v336_v1 = vrot.slane %v331_v56, 1  ;;  %v411_v2 = vrot.slane %v331_v56, 2  ;;  %v481_v5 = vunpack.c.l.bf16 %v459_v52  ;;  %v114_v7 = vsel %vm73_vm0, %v1165_v4, %v113_v62 }
  0x5e   :  { %892 = vst.msk [vmem:[%s1262_s1 + $0x40] sm:$0xf] %vm875_vm4, %v870_v59  ;;  %v850_v63 = vmax.f32 %v721_v61, %v807_v45  ;;  %v646_v3 = vmax.f32 %v564_v60, %v621_v53  ;;  %v614_v8 = vunpack.c.l.bf16 %v590_v58  ;;  %v809_v10 = vsel %vm770_vm3, %v806_v35, %v808_v55 }
  0x5f   :  { %v155_v12 = vmax.f32 %v1160_v57, %v114_v7  ;;  %v243_v13 = vsel %vm202_vm1, %v1179_v15, %v242_v0  ;;  %v337_v4 = vsel %vm73_vm0, %v334_v30, %v336_v1  ;;  %v523_v17 = vrot.slane %v481_v5, 3 }
  0x60   :  { %v871_v14 = vpack.c.bf16 %v850_v63, %v850_v63  ;;  %v722_v16 = vmax.f32 %v646_v3, %v697_v54  ;;  %v692_v19 = vunpack.c.l.bf16 %v670_v6  ;;  %v50_v20 = vunpack.c.l.bf16 %v28_v9 }
  0x61   :  { %v284_v18 = vmax.f32 %v155_v12, %v243_v13  ;;  %v412_v23 = vsel %vm202_vm1, %v409_v31, %v411_v2  ;;  %v622_v57 = vrot.slane %v614_v8, 2  ;;  %v524_v11 = vsel %vm483_vm2, %v521_v34, %v523_v17 }
  0x62   :  { %893 = vst.msk [vmem:[%s1262_s1 + $0x44] sm:$0xf] %vm875_vm4, %v871_v14  ;;  %v851_v22 = vmax.f32 %v722_v16, %v809_v10  ;;  %v156_v25 = vmax.f32 %v50_v20, %v113_v62  ;;  %v698_v26 = vrot.slane %v692_v19, 3  ;;  %v810_v30 = vrot.slane %v692_v19, 4 }
  0x63   :  { %v360_v24 = vmax.f32 %v284_v18, %v337_v4  ;;  %v623_v29 = vsel %vm202_vm1, %v620_v46, %v622_v57 }
  0x64   :  { %v872_v15 = vpack.c.bf16 %v851_v22, %v851_v22  ;;  %v285_v28 = vmax.f32 %v156_v25, %v242_v0  ;;  %v699_v31 = vsel %vm483_vm2, %v696_v47, %v698_v26  ;;  %v811_v21 = vsel %vm770_vm3, %v808_v55, %v810_v30 }
  0x65   :  { %v436_v27 = vmax.f32 %v360_v24, %v412_v23 }
  0x66   :  { %894 = vst.msk [vmem:[%s1262_s1 + $0x48] sm:$0xf] %vm875_vm4, %v872_v15  ;;  %v361_v33 = vmax.f32 %v285_v28, %v336_v1 }
  0x67   :  { %v565_v32 = vmax.f32 %v436_v27, %v524_v11 }
  0x68   :  { %v437_v36 = vmax.f32 %v361_v33, %v411_v2 }
  0x69   :  { %v647_v35 = vmax.f32 %v565_v32, %v623_v29 }
  0x6a   :  { %v566_v37 = vmax.f32 %v437_v36, %v523_v17 }
  0x6b   :  { %v723_v34 = vmax.f32 %v647_v35, %v699_v31 }
  0x6c   :  { %v648_v39 = vmax.f32 %v566_v37, %v622_v57 }
  0x6d   :  { %v852_v38 = vmax.f32 %v723_v34, %v811_v21 }
  0x6e   :  { %v724_v41 = vmax.f32 %v648_v39, %v698_v26 }
  0x6f   :  { %v873_v40 = vpack.c.bf16 %v852_v38, %v852_v38 }
  0x70   :  { %v853_v42 = vmax.f32 %v724_v41, %v810_v30 }
  0x71   :  { %895 = vst.msk [vmem:[%s1262_s1 + $0x4c] sm:$0xf] %vm875_vm4, %v873_v40 }
  0x72   :  { %v874_v43 = vpack.c.bf16 %v853_v42, %v853_v42 }
  0x74   :  { %897 = vst.msk [vmem:[%s1262_s1 + $0x50] sm:$0x1] %vm896_vm5, %v874_v43 }

</bundles_post_ra>
